<compile_context>
chip_gen: v7x
topology: tpu7x:2x2x1
jax: 0.10.0
libtpu: 0.0.40
codegen_flags: <defaults>
</compile_context>

<pallas_src>
import jax
import jax.numpy as jnp
from jax.experimental import pallas as pl
from jax.experimental.pallas import tpu as pltpu


# Below this many elements, plain XLA fusion is strictly faster than a
# pallas_call (fixed launch + ~0.35 us/step overhead).
_MIN_PALLAS_ELEMS = 4096


def _ivp_kernel(t_ref, a_ref, b_ref, c_ref, y_ref, o_ref):
    # t_ref: (1,) scalar in SMEM. a/b/c: (TM, 1) columns. y/o: (TM, D) tiles.
    t = t_ref[0]
    # Per-row scale computed once on the narrow column, then one
    # broadcast-multiply over the lane-dense y tile.
    scale = -(a_ref[...] * t + b_ref[...] + c_ref[...])      # (TM, 1)
    o_ref[...] = scale * y_ref[...]                          # (TM, D)


def _pick_block_rows(n_rows, n_cols):
    # ~2 MiB of f32 y per tile; with double-buffered y + out this stays well
    # under the scoped-VMEM defaults on v5e/v6e and v7x's smaller 64 MiB VMEM.
    rows = (2 * 1024 * 1024) // max(n_cols * 4, 1)
    rows = max(8, (rows // 8) * 8)
    return n_rows if n_rows <= rows else rows


def ivp_nn_forward(t, y, c, a, b, *, block_rows=None):
    """Pallas implementation of IVPNNModule(a, b).forward(t, y, c)."""
    y = jnp.asarray(y, jnp.float32)
    a = jnp.asarray(a, jnp.float32)
    b = jnp.asarray(b, jnp.float32)
    c = jnp.asarray(c, jnp.float32)
    t = jnp.asarray(t, jnp.float32)

    # Tiny-shape fast path: kernel launch overhead would dominate.
    if y.size < _MIN_PALLAS_ELEMS:
        return (-(a * t + b + c) * y).astype(y.dtype)

    N, D = y.shape

    def _col(v):
        # Keep params in their narrow natural shape when possible (usual case:
        # scalars or (N, 1) columns).  Only fall back to a full (N, D)
        # broadcast if the parameter genuinely varies along the feature dim.
        try:
            return jnp.broadcast_to(v, (N, 1))
        except ValueError:
            return jnp.broadcast_to(v, (N, D))

    a_c, b_c, c_c = _col(a), _col(b), _col(c)
    t_arr = jnp.reshape(t, (1,))

    if block_rows is None:
        TM = _pick_block_rows(N, D)
    else:
        TM = N if block_rows >= N else max(8, (block_rows // 8) * 8)

    grid = (pl.cdiv(N, TM),)

    def _row_spec(arr):
        return pl.BlockSpec((TM, arr.shape[1]), lambda i: (i, 0))

    return pl.pallas_call(
        _ivp_kernel,
        out_shape=jax.ShapeDtypeStruct((N, D), y.dtype),
        grid=grid,
        in_specs=[
            pl.BlockSpec(memory_space=pltpu.SMEM),  # t (scalar)
            _row_spec(a_c),                          # a column
            _row_spec(b_c),                          # b column
            _row_spec(c_c),                          # c column
            _row_spec(y),                            # y tile (TM, D)
        ],
        out_specs=pl.BlockSpec((TM, D), lambda i: (i, 0)),
        compiler_params=pltpu.CompilerParams(
            dimension_semantics=("parallel",),       # shard tiles over v7x's 2 TCs
        ),
    )(t_arr, a_c, b_c, c_c, y)


if __name__ == "__main__":
    key = jax.random.PRNGKey(0)
    k1, k2, k3, k4 = jax.random.split(key, 4)

    # Kernel path: lane-dense D (multiple of 128), multi-step row-tiled grid.
    N, D = 256, 256
    a = jax.random.normal(k1, (N, 1), jnp.float32)
    b = jax.random.normal(k2, (N, 1), jnp.float32)
    y = jax.random.normal(k3, (N, D), jnp.float32)
    c = jax.random.normal(k4, (N, 1), jnp.float32)
    t = jnp.float32(0.7)

    ref = -a * y * t - b * y - c * y

    # Force a 4-step grid (TM=64) to exercise the pipelined tiling.
    out = jax.block_until_ready(ivp_nn_forward(t, y, c, a, b, block_rows=64))
    assert out.shape == ref.shape
    assert jnp.allclose(out, ref, atol=1e-5, rtol=1e-5)

    # Default tile sizing (single big tile here).
    out2 = jax.block_until_ready(ivp_nn_forward(t, y, c, a, b))
    assert jnp.allclose(out2, ref, atol=1e-5, rtol=1e-5)

    # Tiny shapes (original test size) take the plain-XLA fast path.
    Ns, Ds = 4, 32
    a_s = jax.random.normal(k1, (Ns, 1), jnp.float32)
    b_s = jax.random.normal(k2, (Ns, 1), jnp.float32)
    y_s = jax.random.normal(k3, (Ns, Ds), jnp.float32)
    c_s = jax.random.normal(k4, (Ns, 1), jnp.float32)
    out_s = jax.block_until_ready(ivp_nn_forward(t, y_s, c_s, a_s, b_s))
    ref_s = -a_s * y_s * t - b_s * y_s - c_s * y_s
    assert jnp.allclose(out_s, ref_s, atol=1e-6, rtol=1e-6)

    print("KERNEL_OK")
</pallas_src>

<mosaic_0001>
module attributes {stable_mosaic.version = 11 : i64} {
  func.func @_ivp_kernel(%arg0: i32, %arg1: memref<1xf32, #tpu.memory_space<smem>>, %arg2: memref<64x1xf32, #tpu.memory_space<vmem>>, %arg3: memref<64x1xf32, #tpu.memory_space<vmem>>, %arg4: memref<64x1xf32, #tpu.memory_space<vmem>>, %arg5: memref<64x256xf32, #tpu.memory_space<vmem>>, %arg6: memref<64x256xf32, #tpu.memory_space<vmem>>) attributes {dimension_semantics = [#tpu.dimension_semantics<parallel>], iteration_bounds = array<i64: 4>, scalar_prefetch = 0 : i64, scratch_operands = 0 : i64, tpu.core_type = #tpu.core_type<tc>, window_params = [{transform_indices = @transform_0, window_bounds = array<i64: 1>}, {transform_indices = @transform_1, window_bounds = array<i64: 64, 1>}, {transform_indices = @transform_2, window_bounds = array<i64: 64, 1>}, {transform_indices = @transform_3, window_bounds = array<i64: 64, 1>}, {transform_indices = @transform_4, window_bounds = array<i64: 64, 256>}, {transform_indices = @transform_5, window_bounds = array<i64: 64, 256>}]} {
    %c0 = arith.constant 0 : index
    %0 = memref.load %arg1[%c0] : memref<1xf32, #tpu.memory_space<smem>>
    %c0_0 = arith.constant 0 : index
    %c0_1 = arith.constant 0 : index
    %1 = vector.load %arg2[%c0_0, %c0_1] : memref<64x1xf32, #tpu.memory_space<vmem>>, vector<64x1xf32>
    %2 = vector.broadcast %0 : f32 to vector<64x1xf32>
    %3 = arith.mulf %1, %2 : vector<64x1xf32>
    %c0_2 = arith.constant 0 : index
    %c0_3 = arith.constant 0 : index
    %4 = vector.load %arg3[%c0_2, %c0_3] : memref<64x1xf32, #tpu.memory_space<vmem>>, vector<64x1xf32>
    %5 = arith.addf %3, %4 : vector<64x1xf32>
    %c0_4 = arith.constant 0 : index
    %c0_5 = arith.constant 0 : index
    %6 = vector.load %arg4[%c0_4, %c0_5] : memref<64x1xf32, #tpu.memory_space<vmem>>, vector<64x1xf32>
    %7 = arith.addf %5, %6 : vector<64x1xf32>
    %cst = arith.constant 0.000000e+00 : f32
    %8 = vector.broadcast %cst : f32 to vector<64x1xf32>
    %9 = arith.subf %8, %7 : vector<64x1xf32>
    %c0_6 = arith.constant 0 : index
    %c0_7 = arith.constant 0 : index
    %10 = vector.load %arg5[%c0_6, %c0_7] : memref<64x256xf32, #tpu.memory_space<vmem>>, vector<64x256xf32>
    %11 = vector.broadcast %9 : vector<64x1xf32> to vector<64x256xf32>
    %12 = arith.mulf %11, %10 : vector<64x256xf32>
    %c0_8 = arith.constant 0 : index
    %c0_9 = arith.constant 0 : index
    %13 = vector.load %arg6[%c0_8, %c0_9] : memref<64x256xf32, #tpu.memory_space<vmem>>, vector<64x256xf32>
    tpu.vector_store %arg6[%c0_8, %c0_9], %12 {strides = array<i32>} : memref<64x256xf32, #tpu.memory_space<vmem>>, vector<64x256xf32>,
    return
  }
  func.func @transform_0(%arg0: i32) -> i32 {
    %c0_i32 = arith.constant 0 : i32
    %c0_i32_0 = arith.constant 0 : i32
    return %c0_i32 : i32
  }
  func.func @transform_1(%arg0: i32) -> (i32, i32) {
    %c0_i32 = arith.constant 0 : i32
    %c0_i32_0 = arith.constant 0 : i32
    return %arg0, %c0_i32 : i32, i32
  }
  func.func @transform_2(%arg0: i32) -> (i32, i32) {
    %c0_i32 = arith.constant 0 : i32
    %c0_i32_0 = arith.constant 0 : i32
    return %arg0, %c0_i32 : i32, i32
  }
  func.func @transform_3(%arg0: i32) -> (i32, i32) {
    %c0_i32 = arith.constant 0 : i32
    %c0_i32_0 = arith.constant 0 : i32
    return %arg0, %c0_i32 : i32, i32
  }
  func.func @transform_4(%arg0: i32) -> (i32, i32) {
    %c0_i32 = arith.constant 0 : i32
    %c0_i32_0 = arith.constant 0 : i32
    return %arg0, %c0_i32 : i32, i32
  }
  func.func @transform_5(%arg0: i32) -> (i32, i32) {
    %c0_i32 = arith.constant 0 : i32
    %c0_i32_0 = arith.constant 0 : i32
    return %arg0, %c0_i32 : i32, i32
  }
}

</mosaic_0001>

<bundles_post_ra>
// kernel: tpu_custom_call.1
= control target key start
LH: loop header
LB: loop body
LE: loop exit
PB: predicated region body
PF: predicated region fallthrough
CT: control target
= control target key end

     0   :  { %s909_s0 = inlined_call_operand.<no memory space> [shape: f32[1], index: 0, kind: input, shape index: {}]   ;;  %s910_s1 = inlined_call_operand.vmem [shape: f32[256,1], index: 1, kind: input, shape index: {}]   ;;  %s911_s2 = inlined_call_operand.vmem [shape: f32[256,1], index: 2, kind: input, shape index: {}]   ;;  %s912_s3 = inlined_call_operand.vmem [shape: f32[256,1], index: 3, kind: input, shape index: {}]   ;;  %s913_s4 = inlined_call_operand.vmem [shape: f32[256,256], index: 4, kind: input, shape index: {}]   ;;  %s914_s5 = inlined_call_operand.hbm [shape: f32[256,256], index: 5, kind: output, shape index: {}]  }
   0x1   :  { %10 = sst [smem:[#allocation2]] %s909_s0 }
   0x2   :  { %11 = vsyncpa [#allocation4], 0 }
   0x3   :  { %13 = vsyncpa [#allocation4 + $0x1], 0  ;;  %s723_s20 = smov 0   ;;  %s725_s21 = smov 0  }
   0x4   :  { %s727_s22 = smov 0   ;;  %s729_s23 = smov 0  }
   0x5 LB: > { %s744_s0 = sadd.s32 4294967295, %s684_s23   ;;  %s555_s24 = sadd.s32 4294967294, %s684_s23   ;;  %s684_s23 = sphi %s729_s23, %s920_s23   ;;  %s680_s22 = sphi %s727_s22, %s919_s22   ;;  %s676_s21 = sphi %s725_s21, %s918_s21   ;;  %s672_s20 = sphi %s723_s20, %s917_s20  }
   0x6   : > { %s748_s25 = sadd.s32 1, %s684_s23   ;;  %s151_s26 = sadd.s32 1, %s680_s22 }
   0x7   : > { %s148_s27 = ssub.s32 %s684_s23, %s748_s25  ;;  %p161_p0 = scmp.ne.s32.totalorder %s680_s22, %s676_s21 }
   0x8   : > { %p149_p1 = scmp.eq.s32.totalorder %s148_s27, 0  ;;  %p162_p2 = scmp.eq.s32.totalorder %s744_s0, 3 }
   0x9   : > { %p167_p3 = scmp.ne.s32.totalorder %s676_s21, %s672_s20  ;;  %p168_p4 = scmp.eq.s32.totalorder %s555_s24, 3 }
   0xa   : > { %s759_s28 = scalar_select %p149_p1, %s680_s22, %s151_s26  }
   0xb   : > { %p761_p5 = por %p162_p2, %p161_p0  ;;  %p765_p6 = por %p168_p4, %p167_p3 }
   0xc   : > { %p558_p7 = scmp.ge.s32.totalorder %s684_s23, 1  ;;  %p226_p8 = scmp.lt.s32.totalorder %s684_s23, 5 }
   0xe   : > { %p227_p9 = pnand %p558_p7, %p226_p8 }
   0xf   : > { %s560_s6 = sshll.u32 (!%p227_p9), %s744_s0, 3  ;;  %s296_s7 = sld [smem:[#allocation2]] (!%p227_p9)  ;;  %v686_v0 = vmov (!%p227_p9), 0  }
  0x10   : > { %230 = sbr.rel (%p227_p9) target bundleno = 193 (0xc1), region = 40  ;;  %621 = vset.pattern.permute.xlu1 (!%p227_p9), %v686_v0  ;;  %620 = vset.pattern.permute.xlu0 (!%p227_p9), %v686_v0  ;;  %p271_p10 = scmp.lt.s32.totalorder (!%p227_p9), %s560_s6, 31 }
  0x11   : > { %s267_s27 = sand.u32 (!%p227_p9), 1, %s676_s21  }
  0x12   : > { %s868_s12 = scalar_lea.sflag (!%p227_p9), [#allocation4], %s267_s27 }
  0x15   : > { %v305_v1 = vstv (!%p227_p9), %s296_s7  ;;  %s559_s7 = sshll.u32 (!%p227_p9), %s267_s27, 7 }
  0x17   : > { %s922_s6 = smov (!%p271_p10, %s560_s6), 31 }
  0x18   : > { %s561_s8 = sshll.u32 %s922_s6, 3  ;;  %s575_s18 = sshll.u32 %s922_s6, 4 }
  0x19   : > { %s778_s11 = scalar_lea.vmem %s910_s1, %s561_s8  ;;  %s783_s14 = scalar_lea.vmem %s911_s2, %s561_s8 }
  0x1a   : > { %s788_s17 = scalar_lea.vmem %s912_s3, %s561_s8  ;;  %v299_v2 = vld [vmem:[%s778_s11 + $0x10] sm:$0xff]  ;;  %v297_v4 = vld [vmem:[%s778_s11] sm:$0xff]  ;;  %v300_v10 = vld [vmem:[%s778_s11 + $0x18] sm:$0xff]  ;;  %s818_s26 = scalar_lea.vmem %s913_s4, %s575_s18 }
  0x1b   : > { %v316_v3 = vld [vmem:[%s783_s14 + $0x10] sm:$0xff]  ;;  %v308_v5 = vmul.f32 %v305_v1, %v299_v2  ;;  %v306_v7 = vmul.f32 %v305_v1, %v297_v4  ;;  %v314_v8 = vld [vmem:[%s783_s14] sm:$0xff]  ;;  %v317_v11 = vld [vmem:[%s783_s14 + $0x18] sm:$0xff]  ;;  %v309_v14 = vmul.f32 %v305_v1, %v300_v10  ;;  %s831_s6 = scalar_lea.vmem [#allocation3], %s559_s7  ;;  %s577_s8 = sshll.u32 %s744_s0, 11 }
  0x1c   : > { %v332_v6 = vld [vmem:[%s788_s17 + $0x10] sm:$0xff]  ;;  %v330_v9 = vld [vmem:[%s788_s17] sm:$0xff]  ;;  %v298_v15 = vld [vmem:[%s778_s11 + $0x8] sm:$0xff]  ;;  %s457_s9 = sshll.u32 %s831_s6, 4  ;;  %s858_s0 = scalar_lea.hbm %s914_s5, %s577_s8  ;;  %s860_s9 = int_to_ptr.vmem [resolvable:$true] %s457_s9 }
  0x1d   : > { %v324_v12 = vadd.f32 %v316_v3, %v308_v5  ;;  %v322_v13 = vadd.f32 %v314_v8, %v306_v7  ;;  %v315_v16 = vld [vmem:[%s783_s14 + $0x8] sm:$0xff]  ;;  %v333_v17 = vld [vmem:[%s788_s17 + $0x18] sm:$0xff]  ;;  %v307_v18 = vmul.f32 %v305_v1, %v298_v15  ;;  %v325_v23 = vadd.f32 %v317_v11, %v309_v14  ;;  %v301_v26 = vld [vmem:[%s778_s11 + $0x20] sm:$0xff]  ;;  %s622_s13 = scalar_lea.vmem %s860_s9, 2048 }
  0x1e   : > { %v302_v19 = vld [vmem:[%s778_s11 + $0x28] sm:$0xff]  ;;  %v318_v27 = vld [vmem:[%s783_s14 + $0x20] sm:$0xff]  ;;  %v310_v30 = vmul.f32 %v305_v1, %v301_v26  ;;  %v304_v32 = vld [vmem:[%s778_s11 + $0x38] sm:$0xff]  ;;  %p623_p11 = scmp.ne.s32.totalorder %s860_s9, %s622_s13 }
  0x1f   : > { %v319_v20 = vld [vmem:[%s783_s14 + $0x28] sm:$0xff]  ;;  %v340_v21 = vadd.f32 %v332_v6, %v324_v12  ;;  %v338_v22 = vadd.f32 %v330_v9, %v322_v13  ;;  %v311_v25 = vmul.f32 %v305_v1, %v302_v19  ;;  %v323_v28 = vadd.f32 %v315_v16, %v307_v18  ;;  %v334_v31 = vld [vmem:[%s788_s17 + $0x20] sm:$0xff]  ;;  %v321_v37 = vld [vmem:[%s783_s14 + $0x38] sm:$0xff] }
  0x20   : > { %v331_v24 = vld [vmem:[%s788_s17 + $0x8] sm:$0xff]  ;;  %v341_v35 = vadd.f32 %v333_v17, %v325_v23  ;;  %v303_v38 = vld [vmem:[%s778_s11 + $0x30] sm:$0xff]  ;;  %v326_v41 = vadd.f32 %v318_v27, %v310_v30  ;;  %v313_v42 = vmul.f32 %v305_v1, %v304_v32  ;;  %v337_v49 = vld [vmem:[%s788_s17 + $0x38] sm:$0xff]  ;;  %p624_p12 = pnand %p623_p11, %p761_p5 }
  0x21   : > { %v335_v29 = vld [vmem:[%s788_s17 + $0x28] sm:$0xff]  ;;  %v348_v33 = vsub.f32 0.0, %v340_v21  ;;  %v346_v34 = vsub.f32 0.0, %v338_v22  ;;  %v327_v36 = vadd.f32 %v319_v20, %v311_v25  ;;  %v320_v39 = vld [vmem:[%s783_s14 + $0x30] sm:$0xff]  ;;  %v339_v40 = vadd.f32 %v331_v24, %v323_v28  ;;  %v358_v58 = vld [vmem:[%s818_s26 + $0x20] sm:$0xff]  ;;  %s687_s14 = smov [#allocation3]  }
  0x22   : > { %v312_v43 = vmul.f32 %v305_v1, %v303_v38  ;;  %v349_v44 = vsub.f32 0.0, %v341_v35  ;;  %v342_v47 = vadd.f32 %v334_v31, %v326_v41  ;;  %v329_v48 = vadd.f32 %v321_v37, %v313_v42  ;;  %v336_v51 = vld [vmem:[%s788_s17 + $0x30] sm:$0xff]  ;;  %v359_v59 = vld [vmem:[%s818_s26 + $0x28] sm:$0xff]  ;;  %v354_v60 = vld [vmem:[%s818_s26] sm:$0xff]  ;;  %p625_p13 = pneg %p624_p12  ;;  %s626_s15 = sshll.u32 %s687_s14, 4  ;;  %s627_s15 = int_to_ptr.vmem [resolvable:$false] %s626_s15 }
  0x23   : > { %382 = vperm.xlu1 %621, %v348_v33   ;;  %372 = vperm.xlu0 %620, %v346_v34   ;;  %v343_v45 = vadd.f32 %v335_v29, %v327_v36  ;;  %v347_v46 = vsub.f32 0.0, %v339_v40  ;;  %v355_v61 = vld [vmem:[%s818_s26 + $0x8] sm:$0xff]  ;;  %v360_v4 = vld [vmem:[%s818_s26 + $0x30] sm:$0xff]  ;;  %v361_v5 = vld [vmem:[%s818_s26 + $0x38] sm:$0xff]  ;;  %s628_s16 = scalar_lea.vmem %s627_s15, 4096  ;;  %p629_p0 = scmp.lt.s32.totalorder %s860_s9, %s627_s15 }
  0x24   : > { %v328_v50 = vadd.f32 %v320_v39, %v312_v43  ;;  %v350_v53 = vsub.f32 0.0, %v342_v47  ;;  %v345_v54 = vadd.f32 %v337_v49, %v329_v48  ;;  %v356_v6 = vld [vmem:[%s818_s26 + $0x10] sm:$0xff]  ;;  %v357_v7 = vld [vmem:[%s818_s26 + $0x18] sm:$0xff]  ;;  %v362_v16 = vld [vmem:[%s818_s26 + $0x40] sm:$0xff]  ;;  %p630_p1 = scmp.lt.s32.totalorder %s628_s16, %s622_s13 }
  0x25   : > { %v351_v52 = vsub.f32 0.0, %v343_v45  ;;  %v364_v14 = vld [vmem:[%s818_s26 + $0x50] sm:$0xff]  ;;  %v365_v15 = vld [vmem:[%s818_s26 + $0x58] sm:$0xff]  ;;  %v363_v17 = vld [vmem:[%s818_s26 + $0x48] sm:$0xff] }
  0x26   : > { %v344_v55 = vadd.f32 %v336_v51, %v328_v50  ;;  %v353_v56 = vsub.f32 0.0, %v345_v54  ;;  %v368_v24 = vld [vmem:[%s818_s26 + $0x70] sm:$0xff]  ;;  %v369_v25 = vld [vmem:[%s818_s26 + $0x78] sm:$0xff]  ;;  %v366_v26 = vld [vmem:[%s818_s26 + $0x60] sm:$0xff]  ;;  %p631_p2 = por %p630_p1, %p629_p0 }
  0x27   : > { %387 = vperm.xlu1 %621, %v349_v44   ;;  %377 = vperm.xlu0 %620, %v347_v46   ;;  %v367_v27 = vld [vmem:[%s818_s26 + $0x68] sm:$0xff] }
  0x28   : > { %v352_v57 = vsub.f32 0.0, %v344_v55  ;;  %p632_p3 = pnand %p631_p2, %p625_p13 }
  0x2b   : > { %397 = vperm.xlu1 %621, %v351_v52   ;;  %392 = vperm.xlu0 %620, %v350_v53  }
  0x2f   : > { %407 = vperm.xlu1 %621, %v353_v56   ;;  %402 = vperm.xlu0 %620, %v352_v57  }
  0xa2   : > { %v383_v62 = vpop.permute.xlu1 %382  ;;  %v373_v63 = vpop.permute.xlu0 %372 }
  0xa3   : > { %v414_v0 = vmul.f32 %v383_v62, %v358_v58  ;;  %v415_v1 = vmul.f32 %v383_v62, %v359_v59  ;;  %v410_v2 = vmul.f32 %v373_v63, %v354_v60  ;;  %v411_v3 = vmul.f32 %v373_v63, %v355_v61 }
  0xa5   : > { %430 = vst [vmem:[%s831_s6 + $0x20] sm:$0xff] %v414_v0  ;;  %431 = vst [vmem:[%s831_s6 + $0x28] sm:$0xff] %v415_v1 }
  0xa6   : > { %426 = vst [vmem:[%s831_s6] sm:$0xff] %v410_v2  ;;  %427 = vst [vmem:[%s831_s6 + $0x8] sm:$0xff] %v411_v3  ;;  %v388_v8 = vpop.permute.xlu1 %387  ;;  %v378_v9 = vpop.permute.xlu0 %377 }
  0xa7   : > { %v416_v10 = vmul.f32 %v388_v8, %v360_v4  ;;  %v417_v11 = vmul.f32 %v388_v8, %v361_v5  ;;  %v412_v12 = vmul.f32 %v378_v9, %v356_v6  ;;  %v413_v13 = vmul.f32 %v378_v9, %v357_v7 }
  0xa9   : > { %432 = vst [vmem:[%s831_s6 + $0x30] sm:$0xff] %v416_v10  ;;  %433 = vst [vmem:[%s831_s6 + $0x38] sm:$0xff] %v417_v11 }
  0xaa   : > { %428 = vst [vmem:[%s831_s6 + $0x10] sm:$0xff] %v412_v12  ;;  %429 = vst [vmem:[%s831_s6 + $0x18] sm:$0xff] %v413_v13  ;;  %v398_v18 = vpop.permute.xlu1 %397  ;;  %v393_v19 = vpop.permute.xlu0 %392 }
  0xab   : > { %v420_v20 = vmul.f32 %v398_v18, %v364_v14  ;;  %v421_v21 = vmul.f32 %v398_v18, %v365_v15  ;;  %v418_v22 = vmul.f32 %v393_v19, %v362_v16  ;;  %v419_v23 = vmul.f32 %v393_v19, %v363_v17 }
  0xad   : > { %436 = vst [vmem:[%s831_s6 + $0x50] sm:$0xff] %v420_v20  ;;  %437 = vst [vmem:[%s831_s6 + $0x58] sm:$0xff] %v421_v21 }
  0xae   : > { %434 = vst [vmem:[%s831_s6 + $0x40] sm:$0xff] %v418_v22  ;;  %435 = vst [vmem:[%s831_s6 + $0x48] sm:$0xff] %v419_v23  ;;  %v408_v28 = vpop.permute.xlu1 %407  ;;  %v403_v29 = vpop.permute.xlu0 %402 }
  0xaf   : > { %v424_v30 = vmul.f32 %v408_v28, %v368_v24  ;;  %v425_v31 = vmul.f32 %v408_v28, %v369_v25  ;;  %v422_v32 = vmul.f32 %v403_v29, %v366_v26  ;;  %v423_v33 = vmul.f32 %v403_v29, %v367_v27 }
  0xb1   : > { %440 = vst [vmem:[%s831_s6 + $0x70] sm:$0xff] %v424_v30  ;;  %441 = vst [vmem:[%s831_s6 + $0x78] sm:$0xff] %v425_v31 }
  0xb2   : > { %438 = vst [vmem:[%s831_s6 + $0x60] sm:$0xff] %v422_v32  ;;  %439 = vst [vmem:[%s831_s6 + $0x68] sm:$0xff] %v423_v33 }
  0xb3   : > { %635 = shalt.err (!%p632_p3)
}
  0xb4   : > { %s636_s17 = scalar_lea.hbm %s858_s0, 2048  ;;  %s640_s24 = scalar_lea.hbm %s914_s5, 8192 }
  0xb5   : > { %p637_p4 = scmp.ne.s32.totalorder %s858_s0, %s636_s17  ;;  %p641_p9 = scmp.lt.u32.totalorder %s858_s0, %s914_s5 }
  0xb6   : > { %p642_p10 = scmp.lt.u32.totalorder %s640_s24, %s636_s17  ;;  %p644_p12 = scmp.lt.u32.totalorder %s636_s17, %s858_s0 }
  0xb7   : > { %p638_p7 = pnand %p637_p4, %p761_p5 }
  0xb8   : > { %p643_p11 = por %p642_p10, %p641_p9 }
  0xb9   : > { %p639_p8 = pneg %p638_p7 }
  0xba   : > { %p645_p13 = por %p644_p12, %p643_p11 }
  0xbc   : > { %p646_p0 = pnand %p645_p13, %p639_p8 }
  0xbe   : > { %649 = shalt.err (!%p646_p0)
}
  0xbf   : > { %s688_s7 = smov 256   ;;  %s689_s6 = smov 16  }
  0xc0   : > { %578 = dma.vmem_to_hbm [thread:$0]  (%p761_p5), %s860_s9, 2048, %s858_s0, %s868_s12, %s688_s7, %s688_s7, %s689_s6  }
  0xc1 PF: > { %p584_p1 = scmp.ge.s32.totalorder %s684_s23, 2  ;;  %s472_s8 = sand.u32 1, %s672_s20  }
  0xc2   : > { %s473_s10 = scalar_lea.sflag [#allocation4], %s472_s8 }
  0xc3   : > { %p581_p2 = pnand %p584_p1, %p765_p6 }
  0xc5   : > { %667 = dma.done.wait (!%p581_p2), %s473_s10, 2048  }
  0xc6   : > { %669 = vsyncadd (!%p581_p2), %s473_s10, 4294965248  ;;  %p16_p3 = scmp.ge.s32.totalorder %s748_s25, 6   ;;  %s917_s20 = smov %s676_s21 }
  0xc7   : > { %s918_s21 = smov %s680_s22  ;;  %s919_s22 = smov %s759_s28 }
  0xc8   : > { %s920_s23 = smov %s748_s25  ;;  %18 = sbr.rel (!%p16_p3) target bundleno = 5 (0x5), region = 84 }
  0xcf   :  { %478 = vsyncpa [#allocation4], 1 }
  0xd0   :  { %480 = vsyncpa [#allocation4 + $0x1], 1 }

</bundles_post_ra>
